<compile_context>
chip_gen: v7x
topology: tpu7x:2x2x1
jax: 0.10.0
libtpu: 0.0.40
codegen_flags: <defaults>
</compile_context>

<pallas_src>
import functools
import random

import jax
import jax.numpy as jnp
from jax.experimental import pallas as pl
from jax.experimental.pallas import tpu as pltpu


def _log_sigmoid(z):
    # Numerically stable log(sigmoid(z)) = min(z, 0) - log(1 + exp(-|z|)).
    return jnp.minimum(z, 0.0) - jnp.log(1.0 + jnp.exp(-jnp.abs(z)))


def _nce_kernel(xr_ref, xt_ref, rows_ref, h1_ref, h2_ref, m_sc, s_sc, *, c):
    """Grid = (col_blocks, row_blocks); the row axis (last) is the softmax reduction."""
    i = pl.program_id(1)                       # row-block index (reduction axis)

    @pl.when(i == 0)
    def _init():
        m_sc[...] = jnp.full(m_sc.shape, -jnp.inf, jnp.float32)
        s_sc[...] = jnp.zeros(s_sc.shape, jnp.float32)

    # Scores already carry the 1/eps factor (folded into the row operand in
    # the wrapper).  Plain (TR,D) x (D,TC) contraction against the
    # pre-transposed column block -> no in-loop transpose of the invariant xc.
    s = jnp.dot(xr_ref[...], xt_ref[...],
                preferred_element_type=jnp.float32)              # (TR, TC)

    # Online column-softmax statistics (softmax over rows == dim 0 of prob).
    m_old = m_sc[...]
    m_new = jnp.maximum(m_old, jnp.max(s, axis=0, keepdims=True))  # (1, TC)
    s_sc[...] = (s_sc[...] * jnp.exp(m_old - m_new)
                 + jnp.sum(jnp.exp(s - m_new), axis=0, keepdims=True))
    m_sc[...] = m_new

    @pl.when(i == pl.num_programs(1) - 1)
    def _finalize():
        rows = rows_ref[...]                                     # (2, TC), already /eps
        den = s_sc[...]                                          # (1, TC)
        # Exact divisions here: tiny vectors, outside the hot loop.
        p1 = jnp.exp(rows[0:1, :] - m_sc[...]) / den             # pred_prob[v1]
        p2 = jnp.exp(rows[1:2, :] - m_sc[...]) / den             # pred_prob[v2]
        h1 = p1 / (p1 + c)
        h2 = p2 / (p2 + c)
        h1_ref[...] = _log_sigmoid(h1)                           # log(sigmoid(h1))
        h2_ref[...] = _log_sigmoid(-h2)                          # log(1 - sigmoid(h2))


def _vmem_estimate(block_rows, block_cols, D, itemsize):
    return (2 * block_rows * D * itemsize        # xr row block, double buffered
            + 2 * D * block_cols * itemsize      # x^T column block, double buffered
            + 2 * 2 * block_cols * 4             # (2, TC) selected score rows, dbl buf
            + 2 * 2 * block_cols * 4             # two (1, TC) outputs, dbl buf
            + 2 * block_cols * 4                 # scratch (running max, exp-sum)
            + 2 * 4 * block_rows * block_cols    # f32 score + exp temporaries
            + (2 << 20))                         # headroom


def _select_tiles(B, D, itemsize, budget):
    # Column tile = output lane dim -> multiple of 128 (or full B); keep at
    # least two column blocks so the "parallel" axis feeds both v7x cores.
    block_cols = B
    for cand in (512, 384, 256, 128):
        if B % cand == 0 and B // cand >= 2:
            block_cols = cand
            break
    # Row tile: fast path -> whole batch resident when x is small (x DMA'd
    # once, single online-softmax pass); otherwise the biggest 128-multiple
    # dividing B.
    if B * D * itemsize <= (4 << 20):
        block_rows = B
    else:
        block_rows = B
        for cand in (512, 256, 128):
            if B % cand == 0:
                block_rows = cand
                break
    # Shrink the row tile if the estimate overflows the per-generation budget
    # (matters on v7x's 64 MiB physical VMEM at large D).
    while (_vmem_estimate(block_rows, block_cols, D, itemsize) > budget
           and block_rows >= 256 and block_rows % 2 == 0
           and B % (block_rows // 2) == 0):
        block_rows //= 2
    return block_rows, block_cols


def nce_criterion(x, labels, v1_idx, v2_idx, *, nce_m, eps,
                  block_rows=None, block_cols=None, matmul_dtype=jnp.float32):
    """Pallas implementation of NCECriterion.forward.

    x: (B, D), labels: (B,).  v1_idx / v2_idx are Python ints (the torch
    module draws them with host-side random.randint).
    matmul_dtype: jnp.bfloat16 roughly halves HBM traffic and 2-4x's MXU
    throughput on v5e/v6e/v7x (accumulation stays f32); kept f32 by default
    pending tolerance validation of the bf16 path.
    Returns (nce_loss scalar float32, batch_size int).
    """
    B, D = x.shape
    itemsize = jnp.dtype(matmul_dtype).itemsize

    # Generation-aware VMEM budget: ~96 MiB on v5e/v6e (128 MiB physical),
    # ~48 MiB on v7x (64 MiB physical).
    try:
        vmem_cap = int(pltpu.get_tpu_info().vmem_capacity_bytes)
    except Exception:
        vmem_cap = 64 << 20                     # conservative (v7x) fallback
    budget = (vmem_cap * 3) // 4

    auto_r, auto_c = _select_tiles(B, D, itemsize, budget)
    block_rows = auto_r if block_rows is None else block_rows
    block_cols = auto_c if block_cols is None else block_cols
    assert B % block_rows == 0 and B % block_cols == 0, (B, block_rows, block_cols)
    # TODO(synk): pad B to a tile multiple for ragged batches -- padded ROWS
    # must be masked out of the exp-sum; padded columns can simply be dropped.

    # Fold 1/eps into the streamed row operand (off the kernel's hot loop).
    xr = (x.astype(jnp.float32) * jnp.float32(1.0 / eps)).astype(matmul_dtype)  # (B, D)
    xt = x.astype(matmul_dtype).T                                               # (D, B)
    # Hoisted query matmul: the two selected score rows, (2,D) x (D,B).
    q = jnp.stack([xr[v1_idx], xr[v2_idx]], axis=0)                             # (2, D)
    rows = jnp.dot(q, xt, preferred_element_type=jnp.float32)                   # (2, B)

    gc = B // block_cols
    gr = B // block_rows

    est = _vmem_estimate(block_rows, block_cols, D, itemsize)
    vmem_limit = int(min(budget, max(32 << 20, 2 * est)))

    kernel = functools.partial(_nce_kernel, c=float(nce_m) / B)

    h1_log, h2_log = pl.pallas_call(
        kernel,
        out_shape=(jax.ShapeDtypeStruct((1, B), jnp.float32),
                   jax.ShapeDtypeStruct((1, B), jnp.float32)),
        grid_spec=pltpu.PrefetchScalarGridSpec(
            num_scalar_prefetch=0,
            grid=(gc, gr),                                       # reduction axis last
            in_specs=[
                # TODO(synk): add pipeline_mode=pl.Buffered(3) to this row-stream
                # spec if profiling shows exposed DMA at small D.
                pl.BlockSpec((block_rows, D), lambda j, i: (i, 0)),   # scaled row block
                pl.BlockSpec((D, block_cols), lambda j, i: (0, j)),   # pre-transposed cols
                pl.BlockSpec((2, block_cols), lambda j, i: (0, j)),   # selected score rows
            ],
            out_specs=[
                pl.BlockSpec((1, block_cols), lambda j, i: (0, j)),
                pl.BlockSpec((1, block_cols), lambda j, i: (0, j)),
            ],
            scratch_shapes=[pltpu.VMEM((1, block_cols), jnp.float32),   # running col max
                            pltpu.VMEM((1, block_cols), jnp.float32)],  # running exp-sum
        ),
        compiler_params=pltpu.CompilerParams(
            dimension_semantics=("parallel", "arbitrary"),
            vmem_limit_bytes=vmem_limit),
    )(xr, xt, rows)

    # Tiny O(B) epilogue, hoisted out of the kernel.
    true_prob = jax.nn.softmax(labels.astype(jnp.float32))   # softmax(labels, dim=0)
    e1 = jnp.dot(true_prob, h1_log[0])
    e2 = jnp.mean(h2_log[0])                                 # uniform noise distribution 1/B
    nce_loss = -e1 - nce_m * e2
    return nce_loss, B


def _reference(x, labels, v1_idx, v2_idx, *, nce_m, eps):
    """Pure-JAX transcription of the torch module (f32, exact matmul)."""
    B = x.shape[0]
    prob = jnp.matmul(x, x.T, precision=jax.lax.Precision.HIGHEST) / eps
    pred_prob = jax.nn.softmax(prob, axis=0)
    true_prob = jax.nn.softmax(labels.astype(jnp.float32), axis=0)
    noise = jnp.full((B,), 1.0 / B, dtype=jnp.float32)
    Pmt_1 = pred_prob[v1_idx]
    Pmt_2 = pred_prob[v2_idx]
    c = nce_m / B
    h_1 = Pmt_1 / (Pmt_1 + c)
    h_2 = Pmt_2 / (Pmt_2 + c)
    h_1_log = jnp.log(jax.nn.sigmoid(h_1))
    h_2_log = jnp.log(1.0 - jax.nn.sigmoid(h_2))
    E1 = true_prob @ h_1_log
    E2 = noise @ h_2_log
    return -E1 - nce_m * E2


if __name__ == "__main__":
    # Module hyperparameters (deterministic, in-script).  eps chosen so the
    # column softmax is well-conditioned and exercises the online max/exp-sum.
    nce_m = 1.0
    eps = 50.0

    B, D = 256, 128
    key = jax.random.PRNGKey(0)
    kx, kl = jax.random.split(key)
    x = jax.random.normal(kx, (B, D), dtype=jnp.float32)
    labels = jax.random.randint(kl, (B,), 0, 5).astype(jnp.float32)

    # torch uses python random.randint; fix indices deterministically host-side.
    random.seed(0)
    v1_idx = random.randint(0, B - 1)
    v2_idx = random.randint(0, B - 1)

    loss, bs = nce_criterion(x, labels, v1_idx, v2_idx, nce_m=nce_m, eps=eps)
    loss = jax.block_until_ready(loss)

    ref = _reference(x, labels, v1_idx, v2_idx, nce_m=nce_m, eps=eps)
    assert bs == B
    assert jnp.allclose(loss, ref, atol=1e-3, rtol=1e-3), (loss, ref)
    print("KERNEL_OK")
</pallas_src>

<mosaic_0001>
module attributes {stable_mosaic.version = 11 : i64} {
  func.func @_nce_kernel(%arg0: i32, %arg1: i32, %arg2: memref<256x128xf32, #tpu.memory_space<vmem>>, %arg3: memref<128x128xf32, #tpu.memory_space<vmem>>, %arg4: memref<2x128xf32, #tpu.memory_space<vmem>>, %arg5: memref<1x128xf32, #tpu.memory_space<vmem>>, %arg6: memref<1x128xf32, #tpu.memory_space<vmem>>, %arg7: memref<1x128xf32, #tpu.memory_space<vmem>>, %arg8: memref<1x128xf32, #tpu.memory_space<vmem>>) attributes {dimension_semantics = [#tpu.dimension_semantics<parallel>, #tpu.dimension_semantics<arbitrary>], iteration_bounds = array<i64: 2, 1>, scalar_prefetch = 0 : i64, scratch_operands = 2 : i64, tpu.core_type = #tpu.core_type<tc>, window_params = [{transform_indices = @transform_0, window_bounds = array<i64: 256, 128>}, {transform_indices = @transform_1, window_bounds = array<i64: 128, 128>}, {transform_indices = @transform_2, window_bounds = array<i64: 2, 128>}, {transform_indices = @transform_3, window_bounds = array<i64: 1, 128>}, {transform_indices = @transform_4, window_bounds = array<i64: 1, 128>}]} {
    %c0_i32 = arith.constant 0 : i32
    %0 = arith.cmpi eq, %arg1, %c0_i32 : i32
    %1 = arith.extui %0 : i1 to i32
    %c0_i32_0 = arith.constant 0 : i32
    %2 = arith.cmpi ne, %1, %c0_i32_0 : i32
    scf.if %2 {
      %cst_16 = arith.constant 0xFF800000 : f32
      %25 = vector.broadcast %cst_16 : f32 to vector<1x128xf32>
      %c0_17 = arith.constant 0 : index
      %c0_18 = arith.constant 0 : index
      %26 = vector.load %arg7[%c0_17, %c0_18] : memref<1x128xf32, #tpu.memory_space<vmem>>, vector<1x128xf32>
      tpu.vector_store %arg7[%c0_17, %c0_18], %25 {strides = array<i32>} : memref<1x128xf32, #tpu.memory_space<vmem>>, vector<1x128xf32>,
      %cst_19 = arith.constant 0.000000e+00 : f32
      %27 = vector.broadcast %cst_19 : f32 to vector<1x128xf32>
      %c0_20 = arith.constant 0 : index
      %c0_21 = arith.constant 0 : index
      %28 = vector.load %arg8[%c0_20, %c0_21] : memref<1x128xf32, #tpu.memory_space<vmem>>, vector<1x128xf32>
      tpu.vector_store %arg8[%c0_20, %c0_21], %27 {strides = array<i32>} : memref<1x128xf32, #tpu.memory_space<vmem>>, vector<1x128xf32>,
    } else {
    }
    %c0 = arith.constant 0 : index
    %c0_1 = arith.constant 0 : index
    %3 = vector.load %arg2[%c0, %c0_1] : memref<256x128xf32, #tpu.memory_space<vmem>>, vector<256x128xf32>
    %c0_2 = arith.constant 0 : index
    %c0_3 = arith.constant 0 : index
    %4 = vector.load %arg3[%c0_2, %c0_3] : memref<128x128xf32, #tpu.memory_space<vmem>>, vector<128x128xf32>
    %cst = arith.constant dense<0.000000e+00> : vector<256x128xf32>
    %5 = tpu.matmul %3, %4, %cst {dimension_numbers = #tpu.dot_dimension_numbers<[1], [0], [0], [1], [0, 0, 1, 1], [], []>} : vector<256x128xf32>, vector<128x128xf32>, vector<256x128xf32> -> vector<256x128xf32>
    %c0_4 = arith.constant 0 : index
    %c0_5 = arith.constant 0 : index
    %6 = vector.load %arg7[%c0_4, %c0_5] : memref<1x128xf32, #tpu.memory_space<vmem>>, vector<1x128xf32>
    %cst_6 = arith.constant dense<0xFF800000> : vector<128xf32>
    %7 = vector.multi_reduction <maximumf>, %5, %cst_6 [0] : vector<256x128xf32> to vector<128xf32>
    %8 = vector.shape_cast %7 : vector<128xf32> to vector<1x128xf32>
    %9 = arith.maximumf %6, %8 : vector<1x128xf32>
    %c0_7 = arith.constant 0 : index
    %c0_8 = arith.constant 0 : index
    %10 = vector.load %arg8[%c0_7, %c0_8] : memref<1x128xf32, #tpu.memory_space<vmem>>, vector<1x128xf32>
    %11 = arith.subf %6, %9 : vector<1x128xf32>
    %12 = math.exp %11 : vector<1x128xf32>
    %13 = arith.mulf %10, %12 : vector<1x128xf32>
    %14 = vector.broadcast %9 : vector<1x128xf32> to vector<256x128xf32>
    %15 = arith.subf %5, %14 : vector<256x128xf32>
    %16 = math.exp %15 : vector<256x128xf32>
    %cst_9 = arith.constant dense<0.000000e+00> : vector<128xf32>
    %17 = vector.multi_reduction <add>, %16, %cst_9 [0] : vector<256x128xf32> to vector<128xf32>
    %18 = vector.shape_cast %17 : vector<128xf32> to vector<1x128xf32>
    %19 = arith.addf %13, %18 : vector<1x128xf32>
    %c0_10 = arith.constant 0 : index
    %c0_11 = arith.constant 0 : index
    %20 = vector.load %arg8[%c0_10, %c0_11] : memref<1x128xf32, #tpu.memory_space<vmem>>, vector<1x128xf32>
    tpu.vector_store %arg8[%c0_10, %c0_11], %19 {strides = array<i32>} : memref<1x128xf32, #tpu.memory_space<vmem>>, vector<1x128xf32>,
    %c0_12 = arith.constant 0 : index
    %c0_13 = arith.constant 0 : index
    %21 = vector.load %arg7[%c0_12, %c0_13] : memref<1x128xf32, #tpu.memory_space<vmem>>, vector<1x128xf32>
    tpu.vector_store %arg7[%c0_12, %c0_13], %9 {strides = array<i32>} : memref<1x128xf32, #tpu.memory_space<vmem>>, vector<1x128xf32>,
    %c0_i32_14 = arith.constant 0 : i32
    %22 = arith.cmpi eq, %arg1, %c0_i32_14 : i32
    %23 = arith.extui %22 : i1 to i32
    %c0_i32_15 = arith.constant 0 : i32
    %24 = arith.cmpi ne, %23, %c0_i32_15 : i32
    scf.if %24 {
      %c0_16 = arith.constant 0 : index
      %c0_17 = arith.constant 0 : index
      %25 = vector.load %arg4[%c0_16, %c0_17] : memref<2x128xf32, #tpu.memory_space<vmem>>, vector<2x128xf32>
      %c0_18 = arith.constant 0 : index
      %c0_19 = arith.constant 0 : index
      %26 = vector.load %arg8[%c0_18, %c0_19] : memref<1x128xf32, #tpu.memory_space<vmem>>, vector<1x128xf32>
      %27 = vector.extract_strided_slice %25 {offsets = [0, 0], sizes = [1, 128], strides = [1, 1]} : vector<2x128xf32> to vector<1x128xf32>
      %c0_20 = arith.constant 0 : index
      %c0_21 = arith.constant 0 : index
      %28 = vector.load %arg7[%c0_20, %c0_21] : memref<1x128xf32, #tpu.memory_space<vmem>>, vector<1x128xf32>
      %29 = arith.subf %27, %28 : vector<1x128xf32>
      %30 = math.exp %29 : vector<1x128xf32>
      %31 = arith.divf %30, %26 : vector<1x128xf32>
      %32 = vector.extract_strided_slice %25 {offsets = [1, 0], sizes = [1, 128], strides = [1, 1]} : vector<2x128xf32> to vector<1x128xf32>
      %c0_22 = arith.constant 0 : index
      %c0_23 = arith.constant 0 : index
      %33 = vector.load %arg7[%c0_22, %c0_23] : memref<1x128xf32, #tpu.memory_space<vmem>>, vector<1x128xf32>
      %34 = arith.subf %32, %33 : vector<1x128xf32>
      %35 = math.exp %34 : vector<1x128xf32>
      %36 = arith.divf %35, %26 : vector<1x128xf32>
      %cst_24 = arith.constant 3.906250e-03 : f32
      %37 = vector.broadcast %cst_24 : f32 to vector<1x128xf32>
      %38 = arith.addf %31, %37 : vector<1x128xf32>
      %39 = arith.divf %31, %38 : vector<1x128xf32>
      %cst_25 = arith.constant 3.906250e-03 : f32
      %40 = vector.broadcast %cst_25 : f32 to vector<1x128xf32>
      %41 = arith.addf %36, %40 : vector<1x128xf32>
      %42 = arith.divf %36, %41 : vector<1x128xf32>
      %cst_26 = arith.constant 0.000000e+00 : f32
      %43 = vector.broadcast %cst_26 : f32 to vector<1x128xf32>
      %44 = arith.minimumf %39, %43 : vector<1x128xf32>
      %45 = math.absf %39 : vector<1x128xf32>
      %cst_27 = arith.constant 0.000000e+00 : f32
      %46 = vector.broadcast %cst_27 : f32 to vector<1x128xf32>
      %47 = arith.subf %46, %45 : vector<1x128xf32>
      %48 = math.exp %47 : vector<1x128xf32>
      %cst_28 = arith.constant 1.000000e+00 : f32
      %49 = vector.broadcast %cst_28 : f32 to vector<1x128xf32>
      %50 = arith.addf %49, %48 : vector<1x128xf32>
      %51 = math.log %50 : vector<1x128xf32>
      %52 = arith.subf %44, %51 : vector<1x128xf32>
      %c0_29 = arith.constant 0 : index
      %c0_30 = arith.constant 0 : index
      %53 = vector.load %arg5[%c0_29, %c0_30] : memref<1x128xf32, #tpu.memory_space<vmem>>, vector<1x128xf32>
      tpu.vector_store %arg5[%c0_29, %c0_30], %52 {strides = array<i32>} : memref<1x128xf32, #tpu.memory_space<vmem>>, vector<1x128xf32>,
      %cst_31 = arith.constant 0.000000e+00 : f32
      %54 = vector.broadcast %cst_31 : f32 to vector<1x128xf32>
      %55 = arith.subf %54, %42 : vector<1x128xf32>
      %cst_32 = arith.constant 0.000000e+00 : f32
      %56 = vector.broadcast %cst_32 : f32 to vector<1x128xf32>
      %57 = arith.minimumf %55, %56 : vector<1x128xf32>
      %58 = math.absf %55 : vector<1x128xf32>
      %cst_33 = arith.constant 0.000000e+00 : f32
      %59 = vector.broadcast %cst_33 : f32 to vector<1x128xf32>
      %60 = arith.subf %59, %58 : vector<1x128xf32>
      %61 = math.exp %60 : vector<1x128xf32>
      %cst_34 = arith.constant 1.000000e+00 : f32
      %62 = vector.broadcast %cst_34 : f32 to vector<1x128xf32>
      %63 = arith.addf %62, %61 : vector<1x128xf32>
      %64 = math.log %63 : vector<1x128xf32>
      %65 = arith.subf %57, %64 : vector<1x128xf32>
      %c0_35 = arith.constant 0 : index
      %c0_36 = arith.constant 0 : index
      %66 = vector.load %arg6[%c0_35, %c0_36] : memref<1x128xf32, #tpu.memory_space<vmem>>, vector<1x128xf32>
      tpu.vector_store %arg6[%c0_35, %c0_36], %65 {strides = array<i32>} : memref<1x128xf32, #tpu.memory_space<vmem>>, vector<1x128xf32>,
    } else {
    }
    return
  }
  func.func @transform_0(%arg0: i32, %arg1: i32) -> (i32, i32) {
    %c0_i32 = arith.constant 0 : i32
    %c0_i32_0 = arith.constant 0 : i32
    return %arg1, %c0_i32 : i32, i32
  }
  func.func @transform_1(%arg0: i32, %arg1: i32) -> (i32, i32) {
    %c0_i32 = arith.constant 0 : i32
    %c0_i32_0 = arith.constant 0 : i32
    return %c0_i32, %arg0 : i32, i32
  }
  func.func @transform_2(%arg0: i32, %arg1: i32) -> (i32, i32) {
    %c0_i32 = arith.constant 0 : i32
    %c0_i32_0 = arith.constant 0 : i32
    return %c0_i32, %arg0 : i32, i32
  }
  func.func @transform_3(%arg0: i32, %arg1: i32) -> (i32, i32) {
    %c0_i32 = arith.constant 0 : i32
    %c0_i32_0 = arith.constant 0 : i32
    return %c0_i32, %arg0 : i32, i32
  }
  func.func @transform_4(%arg0: i32, %arg1: i32) -> (i32, i32) {
    %c0_i32 = arith.constant 0 : i32
    %c0_i32_0 = arith.constant 0 : i32
    return %c0_i32, %arg0 : i32, i32
  }
}

</mosaic_0001>

<bundles_post_ra>
// kernel: tpu_custom_call.1
= control target key start
LH: loop header
LB: loop body
LE: loop exit
PB: predicated region body
PF: predicated region fallthrough
CT: control target
= control target key end

     0   :  { %10 = vsyncpa [#allocation5], 0  ;;  %s2042_s0 = inlined_call_operand.hbm [shape: f32[256,128], index: 0, kind: input, shape index: {}]   ;;  %s2043_s1 = inlined_call_operand.hbm [shape: f32[128,256], index: 1, kind: input, shape index: {}]   ;;  %s2044_s2 = inlined_call_operand.vmem [shape: f32[2,256], index: 2, kind: input, shape index: {}]   ;;  %s2045_s3 = inlined_call_operand.hbm [shape: f32[1,256], index: 3, kind: output, shape index: {0}]   ;;  %s2046_s4 = inlined_call_operand.hbm [shape: f32[1,256], index: 4, kind: output, shape index: {1}]  }
   0x1   :  { %11 = vsyncpa [#allocation8], 0 }
   0x2   :  { %13 = vsyncpa [#allocation8 + $0x1], 0 }
   0x3   :  { %14 = vsyncpa [#allocation6], 0 }
   0x4   :  { %16 = vsyncpa [#allocation6 + $0x1], 0 }
   0x5   :  { %17 = vsyncpa [#allocation11], 0 }
   0x6   :  { %19 = vsyncpa [#allocation11 + $0x1], 0  ;;  %s1527_s15 = smov 0   ;;  %s1529_s16 = smov 0  }
   0x7   :  { %s1531_s17 = smov 0   ;;  %s1533_s18 = smov 0  }
   0x8   :  { %s1535_s19 = smov 0   ;;  %s1537_s20 = smov 0  }
   0x9 LB: > { %s955_s21 = sadd.s32 4294967295, %s1491_s20   ;;  %s956_s22 = sadd.s32 4294967294, %s1491_s20   ;;  %s1491_s20 = sphi %s1537_s20, %s25_s20   ;;  %s1487_s19 = sphi %s1535_s19, %s2078_s19   ;;  %s1483_s18 = sphi %s1533_s18, %s2077_s18   ;;  %s1479_s17 = sphi %s1531_s17, %s2076_s17   ;;  %s1475_s16 = sphi %s1529_s16, %s2075_s16   ;;  %s1471_s15 = sphi %s1527_s15, %s2074_s15  }
   0xa   : > { %p77_p0 = scmp.ne.s32.totalorder %s1479_s17, %s1475_s16  ;;  %p78_p1 = scmp.eq.s32.totalorder %s1491_s20, 0 }
   0xb   : > { %p83_p2 = scmp.ne.s32.totalorder %s1475_s16, %s1471_s15  ;;  %p1564_p3 = scmp.eq.s32.totalorder %s955_s21, 0 }
   0xc   : > { %p1568_p4 = por %p78_p1, %p77_p0  ;;  %p133_p5 = scmp.eq.s32.totalorder %s955_s21, 1 }
   0xd   : > { %s2055_s23 = scalar_select %p1564_p3, 1, 0 }
   0xe   : > { %p1574_p6 = por %p1564_p3, %p83_p2  ;;  %p139_p7 = scmp.eq.s32.totalorder %s956_s22, 1 }
   0xf   : > { %p1578_p8 = por %p133_p5, %p77_p0  ;;  %p957_p9 = scmp.ge.s32.totalorder %s1491_s20, 1 }
  0x10   : > { %s2057_s25 = scalar_select %p1574_p6, 1, 0 }
  0x11   : > { %s2058_s26 = scalar_select %p1578_p8, 1, 0 }
  0x12   : > { %p1583_p10 = por %p139_p7, %p83_p2  ;;  %p172_p11 = scmp.lt.s32.totalorder %s1491_s20, 3 }
  0x13   : > { %s1493_s29 = smov [#allocation4]   ;;  %p1172_p1 = scmp.lt.s32.totalorder %s1491_s20, 2 }
  0x14   : > { %s2059_s27 = scalar_select %p1583_p10, 1, 0 }
  0x15   : > { %p1588_p12 = pnand %p957_p9, %p172_p11  ;;  %s187_s30 = sshll.u32 %s1493_s29, 4  ;;  %s1592_s30 = int_to_ptr.vmem [resolvable:$true] %s187_s30 }
  0x16   : > { %p1606_p2 = pnand %p1172_p1, %p1568_p4  ;;  %s37_s7 = sadd.s32 1, %s1487_s19 }
  0x17   : > { %s2060_s28 = scalar_select %p1588_p12, 1, 0 }
  0x18   : > { %p1156_p13 = pneg %p1588_p12  ;;  %s1315_s10 = scalar_lea.hbm %s2042_s0, 4096 }
  0x19   : > { %s2062_s6 = scalar_select %p1606_p2, 1, 0 }
  0x1a   : > { %p1600_p5 = pnand %p1156_p13, %p1564_p3  ;;  %p1316_p7 = scmp.ne.s32.totalorder %s2042_s0, %s1315_s10 }
  0x1b   : > { %p1322_p4 = scmp.lt.u32.totalorder %s1315_s10, %s2042_s0 }
  0x1c   : > { %p1317_p9 = pneg %p1600_p5 }
  0x1e   : > { %p1318_p11 = pnand %p1317_p9, %p1316_p7 }
  0x20   : > { %p1319_p13 = pneg %p1318_p11 }
  0x22   : > { %p1324_p1 = pnand %p1322_p4, %p1319_p13 }
  0x24   : > { %1327 = shalt.err (!%p1324_p1)
}
  0x25   : > { %s1328_s21 = scalar_lea.vmem %s1592_s30, 4096  ;;  %p1336_p6 = scmp.lt.s32.totalorder %s1592_s30, %s1592_s30 }
  0x26   : > { %p1329_p0 = scmp.ne.s32.totalorder %s1592_s30, %s1328_s21  ;;  %p1337_p3 = scmp.lt.s32.totalorder %s1328_s21, %s1328_s21 }
  0x28   : > { %p1331_p10 = pnand %p1329_p0, %p1317_p9  ;;  %p1338_p12 = por %p1337_p3, %p1336_p6 }
  0x2a   : > { %p1332_p8 = pneg %p1331_p10 }
  0x2c   : > { %p1339_p2 = pnand %p1338_p12, %p1332_p8 }
  0x2e   : > { %1342 = shalt.err (!%p1339_p2)
}
  0x2f   : > { %s2053_s22 = smov 128   ;;  %s2054_s24 = smov 8  }
  0x30   : > { %1159 = dma.hbm_to_vmem [thread:$0]  (!%p1600_p5), %s2042_s0, 4096, %s1592_s30, [#allocation5], %s2053_s22, %s2053_s22, %s2054_s24  }
  0x31   : > { %p39_p3 = scmp.ge.s32.totalorder %s37_s7, 2  ;;  %s70_s9 = sadd.s32 1, %s1479_s17 }
  0x32   : > { %s201_s10 = sand.u32 1, %s1479_s17   ;;  %s961_s13 = sshll.u32 %s1487_s19, 7 }
  0x33   : > { %s2080_s7 = smov (%p39_p3, %s37_s7), 0  ;;  %s960_s11 = sshll.u32 %s201_s10, 7 }
  0x34   : > { %s67_s12 = ssub.s32 %s1487_s19, %s2080_s7  ;;  %s1645_s21 = scalar_lea.hbm %s2043_s1, %s961_s13 }
  0x35   : > { %p68_p6 = scmp.eq.s32.totalorder %s67_s12, 0  ;;  %s205_s30 = scalar_lea.vmem [#allocation7], %s960_s11 }
  0x36   : > { %s211_s29 = sshll.u32 %s205_s30, 4  ;;  %s1652_s22 = scalar_lea.sflag [#allocation8], %s201_s10  ;;  %s1650_s29 = int_to_ptr.vmem [resolvable:$true] %s211_s29 }
  0x37   : > { %s1648_s8 = scalar_select %p68_p6, %s1479_s17, %s70_s9  }
  0x38   : > { %s1343_s24 = scalar_lea.hbm %s1645_s21, 2048  ;;  %p2063_p10 = scmp.ne.s32.totalorder %s2062_s6, 0 }
  0x39   : > { %p1344_p8 = scmp.ne.s32.totalorder %s1645_s21, %s1343_s24  ;;  %s1348_s5 = scalar_lea.hbm %s2043_s1, 4096 }
  0x3a   : > { %p1345_p12 = pneg %p2063_p10  ;;  %p1349_p2 = scmp.lt.u32.totalorder %s1645_s21, %s2043_s1 }
  0x3b   : > { %p1350_p7 = scmp.lt.u32.totalorder %s1348_s5, %s1343_s24  ;;  %p1352_p11 = scmp.lt.u32.totalorder %s1343_s24, %s1645_s21 }
  0x3c   : > { %p1346_p0 = pnand %p1345_p12, %p1344_p8 }
  0x3d   : > { %p1351_p9 = por %p1350_p7, %p1349_p2 }
  0x3e   : > { %p1347_p5 = pneg %p1346_p0 }
  0x3f   : > { %p1353_p13 = por %p1352_p11, %p1351_p9 }
  0x41   : > { %p1354_p4 = pnand %p1353_p13, %p1347_p5 }
  0x43   : > { %1357 = shalt.err (!%p1354_p4)
}
  0x44   : > { %s1358_s9 = scalar_lea.vmem %s1650_s29, 2048  ;;  %s1496_s10 = smov [#allocation7]  }
  0x45   : > { %p1359_p1 = scmp.ne.s32.totalorder %s1650_s29, %s1358_s9  ;;  %s1363_s30 = sshll.u32 %s1496_s10, 4  ;;  %s1364_s30 = int_to_ptr.vmem [resolvable:$false] %s1363_s30 }
  0x46   : > { %s1365_s12 = scalar_lea.vmem %s1364_s30, 4096  ;;  %p1366_p8 = scmp.lt.s32.totalorder %s1650_s29, %s1364_s30 }
  0x47   : > { %p1361_p3 = pnand %p1359_p1, %p1345_p12  ;;  %p1367_p0 = scmp.lt.s32.totalorder %s1365_s12, %s1358_s9 }
  0x49   : > { %p1362_p6 = pneg %p1361_p3  ;;  %p1368_p2 = por %p1367_p0, %p1366_p8 }
  0x4b   : > { %p1369_p7 = pnand %p1368_p2, %p1362_p6 }
  0x4d   : > { %1372 = shalt.err (!%p1369_p7)
}
  0x4e   : > { %s1497_s24 = smov 256   ;;  %s2064_s13 = smov 8  }
  0x4f   : > { %s2065_s5 = smov 128   ;;  %p2066_p12 = scmp.ne.s32.totalorder %s2060_s28, 0 }
  0x50   : > { %1163 = dma.hbm_to_vmem [thread:$0]  (!%p2063_p10), %s1645_s21, 2048, %s1650_s29, %s1652_s22, %s1497_s24, %s2065_s5, %s2064_s13  }
  0x51   : > { %230 = sbr.rel (%p2066_p12) target bundleno = 603 (0x25b), region = 32  ;;  %p2067_p5 = scmp.ne.s32.totalorder (!%p2066_p12), %s2055_s23, 0 }
  0x58   : > { %1454 = dma.done.wait (%p2067_p5), [#allocation5], 4096  }
  0x59   : > { %1456 = vsyncadd (%p2067_p5), [#allocation5], 4294963200  ;;  %s1689_s11 = sand.u32 1, %s1475_s16   ;;  %p2068_p10 = scmp.ne.s32.totalorder %s2057_s25, 0 }
  0x5a   : > { %s964_s6 = sshll.u32 %s1689_s11, 7  ;;  %s237_s14 = scalar_lea.sflag [#allocation8], %s1689_s11 }
  0x5b   : > { %s1693_s9 = scalar_lea.vmem [#allocation7], %s964_s6 }
  0x5c   : > { %1458 = dma.done.wait (%p2068_p10), %s237_s14, 2048  }
  0x5d   : > { %1460 = vsyncadd (%p2068_p10), %s237_s14, 4294965248  ;;  %v315_v0 = vld [vmem:[%s1693_s9] sm:$0xff]  ;;  %v316_v1 = vld [vmem:[%s1693_s9 + $0x8] sm:$0xff]  ;;  %v1498_v56 = vmov -inf   ;;  %v1499_v57 = vmov 0.0   ;;  %p273_p9 = scmp.lt.s32.totalorder %s1483_s18, 1 }
  0x5e   : > { %v317_v2 = vld [vmem:[%s1693_s9 + $0x10] sm:$0xff]  ;;  %v1098_v3 = vpack.c.bf16 %v316_v1, %v315_v0  ;;  %v318_v4 = vld [vmem:[%s1693_s9 + $0x18] sm:$0xff]  ;;  %v319_v6 = vld [vmem:[%s1693_s9 + $0x20] sm:$0xff]  ;;  %281 = vst [vmem:[#allocation2] sm:$0x1] %v1498_v56  ;;  %s966_s29 = sshll.u32 %s1483_s18, 4 }
  0x5f   : > { %v1102_v5 = vpack.c.bf16 %v318_v4, %v317_v2  ;;  %v320_v7 = vld [vmem:[%s1693_s9 + $0x28] sm:$0xff]  ;;  %v283_v9 = vld [vmem:[#allocation4] sm:$0xff]  ;;  %v321_v10 = vld [vmem:[%s1693_s9 + $0x30] sm:$0xff]  ;;  %282 = vst [vmem:[#allocation3] sm:$0x1] %v1499_v57  ;;  %s274_s23 = scalar_select %p273_p9, %s1483_s18, 1 }
  0x60   : > { %1099 = vmatprep.subr.bf16.mxu0 %v1098_v3  ;;  %1130 = vmatprep.subr.bf16.mxu1 %v1098_v3  ;;  %v1106_v8 = vpack.c.bf16 %v320_v7, %v319_v6  ;;  %v322_v11 = vld [vmem:[%s1693_s9 + $0x38] sm:$0xff]  ;;  %v299_v12 = vld [vmem:[#allocation4 + $0x80] sm:$0xff]  ;;  %v324_v15 = vld [vmem:[%s1693_s9 + $0x48] sm:$0xff]  ;;  %s265_s10 = scalar_lea.vmem [#allocation9], %s1689_s11  ;;  %s1954_s13 = scalar_lea.hbm %s2045_s3, %s966_s29 }
  0x61   : > { %1101 = vmatpush3.bf16.msra.mxu0 %v1098_v3  ;;  %1138 = vmatpush3.bf16.msra.mxu1 %v1098_v3  ;;  %v1110_v13 = vpack.c.bf16 %v322_v11, %v321_v10  ;;  %v323_v14 = vld [vmem:[%s1693_s9 + $0x40] sm:$0xff]  ;;  %v325_v17 = vld [vmem:[%s1693_s9 + $0x50] sm:$0xff]  ;;  %v326_v18 = vld [vmem:[%s1693_s9 + $0x58] sm:$0xff]  ;;  %s965_s25 = sshll.u32 %s274_s23, 1  ;;  %s814_s30 = sshll.u32 %s265_s10, 4  ;;  %s1956_s30 = int_to_ptr.vmem [resolvable:$true] %s814_s30 }
  0x62   : > { %1103 = vmatprep.subr.bf16.mxu0 %v1102_v5  ;;  %1131 = vmatprep.subr.bf16.mxu1 %v1102_v5  ;;  %v1114_v16 = vpack.c.bf16 %v324_v15, %v323_v14  ;;  %v1118_v19 = vpack.c.bf16 %v326_v18, %v325_v17  ;;  %v327_v20 = vld [vmem:[%s1693_s9 + $0x60] sm:$0xff]  ;;  %v328_v21 = vld [vmem:[%s1693_s9 + $0x68] sm:$0xff]  ;;  %v329_v23 = vld [vmem:[%s1693_s9 + $0x70] sm:$0xff]  ;;  %s276_s21 = scalar_lea.vmem %s2044_s2, %s965_s25  ;;  %s271_s5 = scalar_lea.vmem [#allocation10], %s1689_s11 }
  0x63   : > { %1050 = vmatprep.mubr.f32.mxu0 %v283_v9  ;;  %1074 = vmatprep.mubr.f32.mxu1 %v299_v12  ;;  %v1122_v22 = vpack.c.bf16 %v328_v21, %v327_v20  ;;  %v330_v24 = vld [vmem:[%s1693_s9 + $0x78] sm:$0xff]  ;;  %v284_v26 = vld [vmem:[#allocation4 + $0x8] sm:$0xff]  ;;  %v285_v28 = vld [vmem:[#allocation4 + $0x10] sm:$0xff]  ;;  %s1961_s6 = sshll.u32 %s271_s5, 4  ;;  %s798_s14 = scalar_lea.sflag [#allocation6], %s1689_s11  ;;  %s1993_s6 = int_to_ptr.vmem [resolvable:$true] %s1961_s6 }
  0x64   : > { %v1126_v25 = vpack.c.bf16 %v330_v24, %v329_v23  ;;  %v300_v27 = vld [vmem:[#allocation4 + $0x88] sm:$0xff]  ;;  %v301_v29 = vld [vmem:[#allocation4 + $0x90] sm:$0xff]  ;;  %v286_v30 = vld [vmem:[#allocation4 + $0x18] sm:$0xff]  ;;  %s1373_s9 = scalar_lea.vmem %s1956_s30, 16  ;;  %p2071_p13 = scmp.ne.s32.totalorder %s2058_s26, 0 }
  0x65   : > { %1105 = vmatpush3.bf16.msra.mxu0 %v1102_v5  ;;  %1139 = vmatpush3.bf16.msra.mxu1 %v1102_v5  ;;  %v302_v31 = vld [vmem:[#allocation4 + $0x98] sm:$0xff]  ;;  %v287_v32 = vld [vmem:[#allocation4 + $0x20] sm:$0xff]  ;;  %v288_v34 = vld [vmem:[#allocation4 + $0x28] sm:$0xff]  ;;  %p1374_p11 = scmp.ne.s32.totalorder %s1956_s30, %s1373_s9  ;;  %s1500_s23 = smov [#allocation9]  }
  0x66   : > { %1107 = vmatprep.subr.bf16.mxu0 %v1106_v8  ;;  %1132 = vmatprep.subr.bf16.mxu1 %v1106_v8  ;;  %v303_v33 = vld [vmem:[#allocation4 + $0xa0] sm:$0xff]  ;;  %v304_v35 = vld [vmem:[#allocation4 + $0xa8] sm:$0xff]  ;;  %v289_v36 = vld [vmem:[#allocation4 + $0x30] sm:$0xff]  ;;  %s1377_s25 = sshll.u32 %s1500_s23, 4  ;;  %s1378_s25 = int_to_ptr.vmem [resolvable:$false] %s1377_s25 }
  0x67   : > { %v305_v37 = vld [vmem:[#allocation4 + $0xb0] sm:$0xff]  ;;  %v290_v38 = vld [vmem:[#allocation4 + $0x38] sm:$0xff]  ;;  %v291_v40 = vld [vmem:[#allocation4 + $0x40] sm:$0xff]  ;;  %p1375_p4 = pnand %p1374_p11, %p2071_p13  ;;  %s1379_s28 = scalar_lea.vmem %s1378_s25, 32 }
  0x68   : > { %v306_v39 = vld [vmem:[#allocation4 + $0xb8] sm:$0xff]  ;;  %v307_v41 = vld [vmem:[#allocation4 + $0xc0] sm:$0xff]  ;;  %v292_v42 = vld [vmem:[#allocation4 + $0x48] sm:$0xff]  ;;  %p1380_p3 = scmp.lt.s32.totalorder %s1956_s30, %s1378_s25  ;;  %p1381_p6 = scmp.lt.s32.totalorder %s1379_s28, %s1373_s9 }
  0x69   : > { %1109 = vmatpush3.bf16.msra.mxu0 %v1106_v8  ;;  %1140 = vmatpush3.bf16.msra.mxu1 %v1106_v8  ;;  %v308_v43 = vld [vmem:[#allocation4 + $0xc8] sm:$0xff]  ;;  %v293_v44 = vld [vmem:[#allocation4 + $0x50] sm:$0xff]  ;;  %v294_v46 = vld [vmem:[#allocation4 + $0x58] sm:$0xff]  ;;  %p1376_p1 = pneg %p1375_p4 }
  0x6a   : > { %1111 = vmatprep.subr.bf16.mxu0 %v1110_v13  ;;  %1133 = vmatprep.subr.bf16.mxu1 %v1110_v13  ;;  %v309_v45 = vld [vmem:[#allocation4 + $0xd0] sm:$0xff]  ;;  %v310_v47 = vld [vmem:[#allocation4 + $0xd8] sm:$0xff]  ;;  %v295_v48 = vld [vmem:[#allocation4 + $0x60] sm:$0xff]  ;;  %p1382_p8 = por %p1381_p6, %p1380_p3 }
  0x6b   : > { %v311_v49 = vld [vmem:[#allocation4 + $0xe0] sm:$0xff]  ;;  %v296_v50 = vld [vmem:[#allocation4 + $0x68] sm:$0xff]  ;;  %v297_v52 = vld [vmem:[#allocation4 + $0x70] sm:$0xff] }
  0x6c   : > { %v312_v51 = vld [vmem:[#allocation4 + $0xe8] sm:$0xff]  ;;  %v313_v53 = vld [vmem:[#allocation4 + $0xf0] sm:$0xff]  ;;  %v298_v54 = vld [vmem:[#allocation4 + $0x78] sm:$0xff]  ;;  %p1383_p0 = pnand %p1382_p8, %p1376_p1 }
  0x6d   : > { %1113 = vmatpush3.bf16.msra.mxu0 %v1110_v13  ;;  %1141 = vmatpush3.bf16.msra.mxu1 %v1110_v13  ;;  %v314_v55 = vld [vmem:[#allocation4 + $0xf8] sm:$0xff] }
  0x6e   : > { %1115 = vmatprep.subr.bf16.mxu0 %v1114_v16  ;;  %1134 = vmatprep.subr.bf16.mxu1 %v1114_v16 }
  0x71   : > { %1117 = vmatpush3.bf16.msra.mxu0 %v1114_v16  ;;  %1142 = vmatpush3.bf16.msra.mxu1 %v1114_v16 }
  0x72   : > { %1119 = vmatprep.subr.bf16.mxu0 %v1118_v19  ;;  %1135 = vmatprep.subr.bf16.mxu1 %v1118_v19 }
  0x75   : > { %1121 = vmatpush3.bf16.msra.mxu0 %v1118_v19  ;;  %1143 = vmatpush3.bf16.msra.mxu1 %v1118_v19 }
  0x76   : > { %1123 = vmatprep.subr.bf16.mxu0 %v1122_v22  ;;  %1136 = vmatprep.subr.bf16.mxu1 %v1122_v22 }
  0x79   : > { %1125 = vmatpush3.bf16.msra.mxu0 %v1122_v22  ;;  %1144 = vmatpush3.bf16.msra.mxu1 %v1122_v22 }
  0x7a   : > { %1127 = vmatprep.subr.bf16.mxu0 %v1126_v25  ;;  %1137 = vmatprep.subr.bf16.mxu1 %v1126_v25 }
  0x7d   : > { %1129 = vmatpush3.bf16.msra.mxu0 %v1126_v25  ;;  %1145 = vmatpush3.bf16.msra.mxu1 %v1126_v25 }
  0x80   : > { %1051 = vmatmul.mubr.f32.vlgmr.msra.gmra.mrb[0].mxu0 %v284_v26  ;;  %1075 = vmatmul.mubr.f32.vlgmr.msra.gmra.mrb[0].mxu1 %v300_v27 }
  0x81   : > { %1053 = vmatprep.mubr.f32.mxu0 %v285_v28  ;;  %1077 = vmatprep.mubr.f32.mxu1 %v301_v29 }
  0x84   : > { %1054 = vmatmul.mubr.f32.gmra.mrb[2].mxu0 %v286_v30  ;;  %1078 = vmatmul.mubr.f32.gmra.mrb[2].mxu1 %v302_v31 }
  0x85   : > { %1056 = vmatprep.mubr.f32.mxu0 %v287_v32  ;;  %1080 = vmatprep.mubr.f32.mxu1 %v303_v33 }
  0x88   : > { %1057 = vmatmul.mubr.f32.gmra.mrb[4].mxu0 %v288_v34  ;;  %1081 = vmatmul.mubr.f32.gmra.mrb[4].mxu1 %v304_v35 }
  0x89   : > { %1059 = vmatprep.mubr.f32.mxu0 %v289_v36  ;;  %1083 = vmatprep.mubr.f32.mxu1 %v305_v37 }
  0x8c   : > { %1060 = vmatmul.mubr.f32.gmra.mrb[6].mxu0 %v290_v38  ;;  %1084 = vmatmul.mubr.f32.gmra.mrb[6].mxu1 %v306_v39 }
  0x8d   : > { %1062 = vmatprep.mubr.f32.mxu0 %v291_v40  ;;  %1086 = vmatprep.mubr.f32.mxu1 %v307_v41 }
  0x90   : > { %1063 = vmatmul.mubr.f32.gmra.mrb[8].mxu0 %v292_v42  ;;  %1087 = vmatmul.mubr.f32.gmra.mrb[8].mxu1 %v308_v43 }
  0x91   : > { %1065 = vmatprep.mubr.f32.mxu0 %v293_v44  ;;  %1089 = vmatprep.mubr.f32.mxu1 %v309_v45 }
  0x94   : > { %1066 = vmatmul.mubr.f32.gmra.mrb[10].mxu0 %v294_v46  ;;  %1090 = vmatmul.mubr.f32.gmra.mrb[10].mxu1 %v310_v47 }
  0x95   : > { %1068 = vmatprep.mubr.f32.mxu0 %v295_v48  ;;  %1092 = vmatprep.mubr.f32.mxu1 %v311_v49 }
  0x98   : > { %1069 = vmatmul.mubr.f32.gmra.mrb[12].mxu0 %v296_v50  ;;  %1093 = vmatmul.mubr.f32.gmra.mrb[12].mxu1 %v312_v51 }
  0x99   : > { %1071 = vmatprep.mubr.f32.mxu0 %v297_v52  ;;  %1095 = vmatprep.mubr.f32.mxu1 %v313_v53 }
  0x9c   : > { %1072 = vmatmul.mubr.f32.gmra.mrb[14].mxu0 %v298_v54  ;;  %1096 = vmatmul.mubr.f32.gmra.mrb[14].mxu1 %v314_v55 }
 0x153   : > { %v1715_v58 = vpop.f32.mrb[0].mxu0  ;;  %v1717_v59 = vpop.f32.mrb[0].mxu1 }
 0x154   : > { %v1719_v60 = vpop.f32.mrb[1].mxu0  ;;  %v1721_v61 = vpop.f32.mrb[1].mxu1 }
 0x157   : > { %v1723_v62 = vpop.f32.mrb[2].mxu0  ;;  %v1725_v63 = vpop.f32.mrb[2].mxu1 }
 0x158   : > { %v1727_v0 = vpop.f32.mrb[3].mxu0  ;;  %v1729_v1 = vpop.f32.mrb[3].mxu1 }
 0x15b   : > { %v1731_v2 = vpop.f32.mrb[4].mxu0  ;;  %v1733_v3 = vpop.f32.mrb[4].mxu1 }
 0x15c   : > { %v558_v4 = vmax.f32 %v1715_v58, %v1731_v2  ;;  %v1737_v5 = vpop.f32.mrb[5].mxu0  ;;  %v1739_v6 = vpop.f32.mrb[5].mxu1 }
 0x15d   : > { %v557_v7 = vmax.f32 %v1719_v60, %v1737_v5 }
 0x15f   : > { %v1743_v8 = vpop.f32.mrb[6].mxu0  ;;  %v1745_v9 = vpop.f32.mrb[6].mxu1 }
 0x160   : > { %v560_v10 = vmax.f32 %v1723_v62, %v1743_v8  ;;  %v1749_v11 = vpop.f32.mrb[7].mxu0  ;;  %v1751_v12 = vpop.f32.mrb[7].mxu1 }
 0x161   : > { %v559_v13 = vmax.f32 %v1727_v0, %v1749_v11 }
 0x163   : > { %v1755_v14 = vpop.f32.mrb[8].mxu0  ;;  %v1757_v15 = vpop.f32.mrb[8].mxu1 }
 0x164   : > { %v562_v16 = vmax.f32 %v558_v4, %v1755_v14  ;;  %v1760_v17 = vpop.f32.mrb[9].mxu0  ;;  %v1762_v18 = vpop.f32.mrb[9].mxu1 }
 0x165   : > { %v561_v19 = vmax.f32 %v557_v7, %v1760_v17  ;;  %v601_v7 = vlaneseq }
 0x167   : > { %v1765_v20 = vpop.f32.mrb[10].mxu0  ;;  %v1767_v21 = vpop.f32.mrb[10].mxu1 }
 0x168   : > { %v564_v22 = vmax.f32 %v560_v10, %v1765_v20  ;;  %v1770_v23 = vpop.f32.mrb[11].mxu0  ;;  %v1772_v24 = vpop.f32.mrb[11].mxu1 }
 0x169   : > { %v563_v25 = vmax.f32 %v559_v13, %v1770_v23 }
 0x16b   : > { %v1775_v26 = vpop.f32.mrb[12].mxu0  ;;  %v1777_v27 = vpop.f32.mrb[12].mxu1 }
 0x16c   : > { %v566_v28 = vmax.f32 %v562_v16, %v1775_v26  ;;  %v1780_v29 = vpop.f32.mrb[13].mxu0  ;;  %v1782_v30 = vpop.f32.mrb[13].mxu1  ;;  %v602_v16 = vshrl.u32 %v601_v7, 7 }
 0x16d   : > { %v565_v31 = vmax.f32 %v561_v19, %v1780_v29 }
 0x16e   : > { %v570_v32 = vmax.f32 %v566_v28, %v1717_v59  ;;  %v1813_v28 = vsub.s32 0, %v602_v16 }
 0x16f   : > { %v569_v33 = vmax.f32 %v565_v31, %v1721_v61  ;;  %v1787_v34 = vpop.f32.mrb[14].mxu0  ;;  %v1789_v35 = vpop.f32.mrb[14].mxu1 }
 0x170   : > { %v568_v36 = vmax.f32 %v564_v22, %v1787_v34  ;;  %v1792_v37 = vpop.f32.mrb[15].mxu0  ;;  %v574_v38 = vmax.f32 %v570_v32, %v1733_v3  ;;  %v1795_v39 = vpop.f32.mrb[15].mxu1  ;;  %v1811_v22 = vld [vmem:[#allocation2] sm:$0x1] }
 0x171   : > { %v567_v40 = vmax.f32 %v563_v25, %v1792_v37  ;;  %v573_v41 = vmax.f32 %v569_v33, %v1739_v6 }
 0x172   : > { %v572_v42 = vmax.f32 %v568_v36, %v1725_v63  ;;  %v578_v43 = vmax.f32 %v574_v38, %v1757_v15 }
 0x173   : > { %v571_v44 = vmax.f32 %v567_v40, %v1729_v1  ;;  %v577_v45 = vmax.f32 %v573_v41, %v1762_v18 }
 0x174   : > { %v582_v46 = vmax.f32 %v578_v43, %v1777_v27  ;;  %v576_v47 = vmax.f32 %v572_v42, %v1745_v9 }
 0x175   : > { %v581_v48 = vmax.f32 %v577_v45, %v1782_v30  ;;  %v575_v49 = vmax.f32 %v571_v44, %v1751_v12 }
 0x176   : > { %v580_v50 = vmax.f32 %v576_v47, %v1767_v21 }
 0x177   : > { %v585_v51 = vmax.f32 %v581_v48, %v582_v46  ;;  %v579_v52 = vmax.f32 %v575_v49, %v1772_v24 }
 0x178   : > { %v584_v53 = vmax.f32 %v580_v50, %v1789_v35 }
 0x179   : > { %v583_v54 = vmax.f32 %v579_v52, %v1795_v39 }
 0x17b   : > { %v586_v55 = vmax.f32 %v583_v54, %v584_v53 }
 0x17d   : > { %v587_v56 = vmax.f32 %v585_v51, %v586_v55 }
 0x17f   : > { %v588_v57 = vrot.slane %v587_v56, 4 }
 0x181   : > { %v589_v4 = vmax.f32 %v587_v56, %v588_v57 }
 0x183   : > { %v590_v10 = vrot.slane %v589_v4, 2 }
 0x185   : > { %v591_v13 = vmax.f32 %v589_v4, %v590_v10 }
 0x187   : > { %v592_v19 = vrot.slane %v591_v13, 1 }
 0x189   : > { %v593_v25 = vmax.f32 %v591_v13, %v592_v19 }
 0x18b   : > { %v1816_v31 = vmax.f32 %v1811_v22, %v593_v25 }
 0x18d   : > { %v1822_v33 = vrot.slane %v1816_v31, %v1813_v28  ;;  %741 = vst [vmem:[#allocation2] sm:$0x1] %v1816_v31 }
 0x18f   : > { %v606_v36 = vsub.f32 %v1719_v60, %v1822_v33  ;;  %v607_v38 = vsub.f32 %v1715_v58, %v1822_v33  ;;  %v608_v40 = vsub.f32 %v1727_v0, %v1822_v33  ;;  %v609_v41 = vsub.f32 %v1723_v62, %v1822_v33 }
 0x190   : > { %v610_v42 = vsub.f32 %v1737_v5, %v1822_v33  ;;  %v611_v43 = vsub.f32 %v1731_v2, %v1822_v33  ;;  %v612_v44 = vsub.f32 %v1749_v11, %v1822_v33  ;;  %v613_v60 = vsub.f32 %v1743_v8, %v1822_v33 }
 0x191   : > { %v614_v58 = vsub.f32 %v1760_v17, %v1822_v33  ;;  %v615_v0 = vsub.f32 %v1755_v14, %v1822_v33  ;;  %v616_v62 = vsub.f32 %v1770_v23, %v1822_v33  ;;  %v617_v5 = vsub.f32 %v1765_v20, %v1822_v33 }
 0x192   : > { %v618_v2 = vsub.f32 %v1780_v29, %v1822_v33  ;;  %v619_v11 = vsub.f32 %v1775_v26, %v1822_v33  ;;  %v620_v8 = vsub.f32 %v1792_v37, %v1822_v33  ;;  %v621_v17 = vsub.f32 %v1787_v34, %v1822_v33 }
 0x193   : > { %v622_v14 = vsub.f32 %v1721_v61, %v1822_v33  ;;  %v623_v23 = vsub.f32 %v1717_v59, %v1822_v33  ;;  %v624_v20 = vsub.f32 %v1729_v1, %v1822_v33  ;;  %v625_v29 = vsub.f32 %v1725_v63, %v1822_v33 }
 0x194   : > { %v626_v26 = vsub.f32 %v1739_v6, %v1822_v33  ;;  %v627_v37 = vsub.f32 %v1733_v3, %v1822_v33  ;;  %v628_v34 = vsub.f32 %v1751_v12, %v1822_v33  ;;  %v629_v45 = vsub.f32 %v1745_v9, %v1822_v33 }
 0x195   : > { %v630_v46 = vsub.f32 %v1762_v18, %v1822_v33  ;;  %v631_v47 = vsub.f32 %v1757_v15, %v1822_v33  ;;  %v632_v48 = vsub.f32 %v1772_v24, %v1822_v33  ;;  %v633_v49 = vsub.f32 %v1767_v21, %v1822_v33 }
 0x196   : > { %v634_v50 = vsub.f32 %v1782_v30, %v1822_v33  ;;  %v635_v51 = vsub.f32 %v1777_v27, %v1822_v33  ;;  %v636_v52 = vsub.f32 %v1795_v39, %v1822_v33  ;;  %v638_v54 = vmul.f32 1.442695, %v606_v36 }
 0x197   : > { %v640_v55 = vmul.f32 1.442695, %v607_v38  ;;  %v642_v56 = vmul.f32 1.442695, %v608_v40  ;;  %v644_v57 = vmul.f32 1.442695, %v609_v41  ;;  %v2069_v30 = vsub.f32 %v1789_v35, %v1822_v33 }
 0x198   : > { %1229 = vpow2.f32 %v638_v54  ;;  %v646_v4 = vmul.f32 1.442695, %v610_v42  ;;  %v648_v7 = vmul.f32 1.442695, %v611_v43  ;;  %v650_v10 = vmul.f32 1.442695, %v612_v44 }
 0x199   : > { %1231 = vpow2.f32 %v640_v55  ;;  %v652_v13 = vmul.f32 1.442695, %v613_v60  ;;  %v654_v25 = vmul.f32 1.442695, %v614_v58  ;;  %v656_v36 = vmul.f32 1.442695, %v615_v0 }
 0x19a   : > { %1233 = vpow2.f32 %v642_v56  ;;  %v658_v41 = vmul.f32 1.442695, %v616_v62  ;;  %v660_v43 = vmul.f32 1.442695, %v617_v5  ;;  %v662_v60 = vmul.f32 1.442695, %v618_v2 }
 0x19b   : > { %1235 = vpow2.f32 %v644_v57  ;;  %v664_v58 = vmul.f32 1.442695, %v619_v11  ;;  %v666_v0 = vmul.f32 1.442695, %v620_v8  ;;  %v668_v62 = vmul.f32 1.442695, %v621_v17 }
 0x19c   : > { %1237 = vpow2.f32 %v646_v4  ;;  %v670_v5 = vmul.f32 1.442695, %v622_v14  ;;  %v672_v11 = vmul.f32 1.442695, %v623_v23  ;;  %v674_v17 = vmul.f32 1.442695, %v624_v20 }
 0x19d   : > { %1239 = vpow2.f32 %v648_v7  ;;  %v676_v61 = vmul.f32 1.442695, %v625_v29  ;;  %v678_v59 = vmul.f32 1.442695, %v626_v26  ;;  %v680_v1 = vmul.f32 1.442695, %v627_v37 }
 0x19e   : > { %1241 = vpow2.f32 %v650_v10  ;;  %v682_v63 = vmul.f32 1.442695, %v628_v34  ;;  %v684_v6 = vmul.f32 1.442695, %v629_v45  ;;  %v686_v3 = vmul.f32 1.442695, %v630_v46 }
 0x19f   : > { %1243 = vpow2.f32 %v652_v13  ;;  %v688_v12 = vmul.f32 1.442695, %v631_v47  ;;  %v690_v9 = vmul.f32 1.442695, %v632_v48  ;;  %v692_v18 = vmul.f32 1.442695, %v633_v49 }
 0x1a0   : > { %1245 = vpow2.f32 %v654_v25  ;;  %v694_v15 = vmul.f32 1.442695, %v634_v50  ;;  %v696_v24 = vmul.f32 1.442695, %v635_v51  ;;  %v698_v21 = vmul.f32 1.442695, %v636_v52 }
 0x1a1   : > { %1247 = vpow2.f32 %v656_v36  ;;  %v700_v50 = vmul.f32 1.442695, %v2069_v30 }
 0x1a2   : > { %v1230_v16 = vpop.eup %1229  ;;  %1249 = vpow2.f32 %v658_v41 }
 0x1a3   : > { %v1232_v19 = vpop.eup %1231  ;;  %1251 = vpow2.f32 %v660_v43 }
 0x1a4   : > { %v702_v32 = vadd.f32 %v1232_v19, %v1230_v16  ;;  %v1234_v53 = vpop.eup %1233  ;;  %1253 = vpow2.f32 %v662_v60 }
 0x1a5   : > { %v1236_v40 = vpop.eup %1235  ;;  %1255 = vpow2.f32 %v664_v58 }
 0x1a6   : > { %v703_v38 = vadd.f32 %v1234_v53, %v702_v32  ;;  %v1238_v42 = vpop.eup %1237  ;;  %1257 = vpow2.f32 %v666_v0 }
 0x1a7   : > { %v1240_v44 = vpop.eup %1239  ;;  %1259 = vpow2.f32 %v668_v62 }
 0x1a8   : > { %v704_v54 = vadd.f32 %v1236_v40, %v703_v38  ;;  %v1242_v57 = vpop.eup %1241  ;;  %1261 = vpow2.f32 %v670_v5 }
 0x1a9   : > { %v1244_v7 = vpop.eup %1243  ;;  %1263 = vpow2.f32 %v672_v11 }
 0x1aa   : > { %v705_v55 = vadd.f32 %v1238_v42, %v704_v54  ;;  %v1246_v53 = vpop.eup %1245  ;;  %1265 = vpow2.f32 %v674_v17 }
 0x1ab   : > { %v1248_v13 = vpop.eup %1247  ;;  %1267 = vpow2.f32 %v676_v61 }
 0x1ac   : > { %v706_v56 = vadd.f32 %v1240_v44, %v705_v55  ;;  %v1250_v16 = vpop.eup %1249  ;;  %1269 = vpow2.f32 %v678_v59 }
 0x1ad   : > { %v1252_v8 = vpop.eup %1251  ;;  %1271 = vpow2.f32 %v680_v1 }
 0x1ae   : > { %v707_v4 = vadd.f32 %v1242_v57, %v706_v56  ;;  %v1254_v36 = vpop.eup %1253  ;;  %1273 = vpow2.f32 %v682_v63 }
 0x1af   : > { %v1256_v38 = vpop.eup %1255  ;;  %1275 = vpow2.f32 %v684_v6 }
 0x1b0   : > { %v708_v32 = vadd.f32 %v1244_v7, %v707_v4  ;;  %v1258_v40 = vpop.eup %1257  ;;  %1277 = vpow2.f32 %v686_v3 }
 0x1b1   : > { %v1260_v41 = vpop.eup %1259  ;;  %1279 = vpow2.f32 %v688_v12 }
 0x1b2   : > { %v709_v10 = vadd.f32 %v1246_v53, %v708_v32  ;;  %v1262_v54 = vpop.eup %1261  ;;  %1281 = vpow2.f32 %v690_v9 }
 0x1b3   : > { %v1264_v42 = vpop.eup %1263  ;;  %1283 = vpow2.f32 %v692_v18 }
 0x1b4   : > { %v710_v2 = vadd.f32 %v1248_v13, %v709_v10  ;;  %v1266_v43 = vpop.eup %1265  ;;  %1285 = vpow2.f32 %v694_v15  ;;  %v2070_v10 = vsub.f32 %v1811_v22, %v1816_v31  ;;  %v747_v31 = vld [vmem:[#allocation2] sm:$0x1] }
 0x1b5   : > { %v1268_v55 = vpop.eup %1267  ;;  %1287 = vpow2.f32 %v696_v24  ;;  %v757_v59 = vrot.slane %v747_v31, %v1813_v28 }
 0x1b6   : > { %v711_v19 = vadd.f32 %v1250_v16, %v710_v2  ;;  %v1270_v44 = vpop.eup %1269  ;;  %1289 = vpow2.f32 %v698_v21  ;;  %v597_v13 = vmul.f32 1.442695, %v2070_v10 }
 0x1b7   : > { %v1272_v60 = vpop.eup %1271  ;;  %1291 = vpow2.f32 %v700_v50 }
 0x1b8   : > { %v712_v25 = vadd.f32 %v1252_v8, %v711_v19  ;;  %v1274_v56 = vpop.eup %1273  ;;  %1293 = vpow2.f32 %v597_v13 }
 0x1b9   : > { %v1276_v57 = vpop.eup %1275 }
 0x1ba   : > { %v713_v14 = vadd.f32 %v1254_v36, %v712_v25  ;;  %v1278_v58 = vpop.eup %1277  ;;  %v595_v36 = vld [vmem:[#allocation3] sm:$0x1] }
 0x1bb   : > { %v1280_v7 = vpop.eup %1279 }
 0x1bc   : > { %v714_v23 = vadd.f32 %v1256_v38, %v713_v14  ;;  %v1282_v51 = vpop.eup %1281  ;;  %v745_v38 = vld [vmem:[%s276_s21] sm:$0x3] }
 0x1bd   : > { %v1284_v32 = vpop.eup %1283  ;;  %v759_v1 = vsub.f32 %v745_v38, %v757_v59 }
 0x1be   : > { %v715_v20 = vadd.f32 %v1258_v40, %v714_v23  ;;  %v1286_v39 = vpop.eup %1285  ;;  %v748_v40 = vsub.f32 %v745_v38, %v747_v31 }
 0x1bf   : > { %v1288_v62 = vpop.eup %1287 }
 0x1c0   : > { %v716_v29 = vadd.f32 %v1260_v41, %v715_v20  ;;  %v1290_v33 = vpop.eup %1289  ;;  %v749_v20 = vmul.f32 1.442695, %v748_v40  ;;  %v760_v41 = vmul.f32 1.442695, %v759_v1 }
 0x1c1   : > { %v1292_v2 = vpop.eup %1291 }
 0x1c2   : > { %v717_v26 = vadd.f32 %v1262_v54, %v716_v29  ;;  %v1294_v25 = vpop.eup %1293  ;;  %1295 = vpow2.f32 %v749_v20 }
 0x1c3   : > { %v599_v61 = vmul.f32 %v1294_v25, %v595_v36 }
 0x1c4   : > { %v718_v37 = vadd.f32 %v1264_v42, %v717_v26 }
 0x1c6   : > { %v719_v34 = vadd.f32 %v1266_v43, %v718_v37 }
 0x1c8   : > { %v720_v45 = vadd.f32 %v1268_v55, %v719_v34 }
 0x1ca   : > { %v721_v46 = vadd.f32 %v1270_v44, %v720_v45 }
 0x1cc   : > { %v722_v47 = vadd.f32 %v1272_v60, %v721_v46  ;;  %v1296_v54 = vpop.eup %1295 }
 0x1ce   : > { %v723_v48 = vadd.f32 %v1274_v56, %v722_v47 }
 0x1d0   : > { %v724_v49 = vadd.f32 %v1276_v57, %v723_v48 }
 0x1d2   : > { %v725_v4 = vadd.f32 %v1278_v58, %v724_v49 }
 0x1d4   : > { %v726_v27 = vadd.f32 %v1280_v7, %v725_v4 }
 0x1d6   : > { %v727_v0 = vadd.f32 %v1282_v51, %v726_v27 }
 0x1d8   : > { %v728_v53 = vadd.f32 %v1284_v32, %v727_v0 }
 0x1da   : > { %v729_v52 = vadd.f32 %v1286_v39, %v728_v53 }
 0x1dc   : > { %v730_v35 = vadd.f32 %v1288_v62, %v729_v52 }
 0x1de   : > { %v731_v5 = vadd.f32 %v1290_v33, %v730_v35 }
 0x1e0   : > { %v732_v16 = vadd.f32 %v1292_v2, %v731_v5 }
 0x1e2   : > { %v733_v11 = vrot.slane %v732_v16, 4 }
 0x1e4   : > { %v734_v19 = vadd.f32 %v733_v11, %v732_v16 }
 0x1e6   : > { %v735_v8 = vrot.slane %v734_v19, 2 }
 0x1e8   : > { %v736_v17 = vadd.f32 %v735_v8, %v734_v19 }
 0x1ea   : > { %v737_v22 = vrot.slane %v736_v17, 1 }
 0x1ec   : > { %v738_v14 = vadd.f32 %v737_v22, %v736_v17 }
 0x1ee   : > { %v739_v23 = vadd.f32 %v738_v14, %v599_v61 }
 0x1f0   : > { %740 = vst [vmem:[#allocation3] sm:$0x1] %v739_v23 }
 0x1f7   : > { %v746_v63 = vld [vmem:[#allocation3] sm:$0x1] }
 0x1f8   : > { %1297 = vrcp.f32 %v746_v63  ;;  %v766_v29 = vrot.slane %v746_v63, %v1813_v28 }
 0x1f9   : > { %1299 = vpow2.f32 %v760_v41 }
 0x1fa   : > { %1301 = vrcp.f32 %v766_v29 }
 0x202   : > { %v1298_v6 = vpop.eup %1297 }
 0x203   : > { %v1300_v26 = vpop.eup %1299  ;;  %v752_v42 = vmul.f32 %v1298_v6, %v1296_v54 }
 0x204   : > { %v1302_v3 = vpop.eup %1301 }
 0x205   : > { %v770_v37 = vadd.f32 0.00390625, %v752_v42  ;;  %v769_v43 = vmul.f32 %v1302_v3, %v1300_v26 }
 0x207   : > { %1303 = vrcp.f32 %v770_v37  ;;  %v773_v12 = vadd.f32 0.00390625, %v769_v43 }
 0x209   : > { %1305 = vrcp.f32 %v773_v12 }
 0x211   : > { %v1304_v34 = vpop.eup %1303 }
 0x212   : > { %v772_v55 = vmul.f32 %v1304_v34, %v752_v42 }
 0x213   : > { %v1306_v9 = vpop.eup %1305 }
 0x214   : > { %v777_v45 = vand.u32 2147483647, %v772_v55  ;;  %v775_v44 = vmul.f32 %v1306_v9, %v769_v43  ;;  %v776_v49 = vmin.f32 %v772_v55, 0.0 }
 0x216   : > { %v778_v18 = vsub.f32 0.0, %v777_v45  ;;  %v786_v28 = vsub.f32 0.0, %v775_v44 }
 0x218   : > { %v779_v46 = vmul.f32 1.442695, %v778_v18  ;;  %v788_v60 = vand.u32 2147483647, %v786_v28  ;;  %v787_v4 = vmin.f32 %v786_v28, 0.0 }
 0x21a   : > { %1307 = vpow2.f32 %v779_v46  ;;  %v789_v15 = vsub.f32 0.0, %v788_v60 }
 0x21c   : > { %v790_v47 = vmul.f32 1.442695, %v789_v15 }
 0x21e   : > { %1309 = vpow2.f32 %v790_v47 }
 0x224   : > { %v1308_v56 = vpop.eup %1307 }
 0x225   : > { %v781_v24 = vadd.f32 1.0, %v1308_v56 }
 0x227   : > { %1311 = vlog2.f32 %v781_v24 }
 0x228   : > { %v1310_v48 = vpop.eup %1309 }
 0x229   : > { %v792_v57 = vadd.f32 1.0, %v1310_v48 }
 0x22b   : > { %1313 = vlog2.f32 %v792_v57 }
 0x231   : > { %v1312_v21 = vpop.eup %1311 }
 0x232   : > { %v783_v58 = vmul.f32 0.6931472, %v1312_v21 }
 0x234   : > { %v784_v30 = vsub.f32 %v776_v49, %v783_v58 }
 0x235   : > { %v1314_v50 = vpop.eup %1313 }
 0x236   : > { %785 = vst [vmem:[%s265_s10] sm:$0x1] %v784_v30  ;;  %v794_v7 = vmul.f32 0.6931472, %v1314_v50 }
 0x237   : > { %1386 = shalt.err (!%p1383_p0)
}
 0x238   : > { %s1387_s22 = scalar_lea.hbm %s1954_s13, 16  ;;  %s1391_s12 = scalar_lea.hbm %s2045_s3, 32 }
 0x239   : > { %p1388_p2 = scmp.ne.s32.totalorder %s1954_s13, %s1387_s22  ;;  %p1392_p5 = scmp.lt.u32.totalorder %s1954_s13, %s2045_s3 }
 0x23a   : > { %p1393_p10 = scmp.lt.u32.totalorder %s1391_s12, %s1387_s22  ;;  %p1395_p11 = scmp.lt.u32.totalorder %s1387_s22, %s1954_s13 }
 0x23b   : > { %p1389_p7 = pnand %p1388_p2, %p2071_p13 }
 0x23c   : > { %p1394_p9 = por %p1393_p10, %p1392_p5 }
 0x23d   : > { %p1390_p12 = pneg %p1389_p7 }
 0x23e   : > { %p1396_p4 = por %p1395_p11, %p1394_p9 }
 0x240   : > { %p1397_p1 = pnand %p1396_p4, %p1390_p12 }
 0x242   : > { %1400 = shalt.err (!%p1397_p1)
}
 0x243   : > { %1152 = dma.vmem_to_hbm [thread:$0]  (%p2071_p13), %s1956_s30, 16, %s1954_s13, %s798_s14   ;;  %v795_v27 = vsub.f32 %v787_v4, %v794_v7 }
 0x244   : > { %s1990_s28 = scalar_lea.hbm %s2046_s4, %s966_s29  ;;  %s802_s22 = scalar_lea.sflag [#allocation11], %s1689_s11 }
 0x245   : > { %796 = vst [vmem:[%s271_s5 - $0x1] sm:$0x2] %v795_v27  ;;  %s1401_s21 = scalar_lea.vmem %s1993_s6, 16  ;;  %s1501_s30 = smov [#allocation10]  }
 0x246   : > { %p1402_p3 = scmp.ne.s32.totalorder %s1993_s6, %s1401_s21  ;;  %s1405_s18 = sshll.u32 %s1501_s30, 4  ;;  %s1406_s18 = int_to_ptr.vmem [resolvable:$false] %s1405_s18 }
 0x247   : > { %s1407_s13 = scalar_lea.vmem %s1406_s18, 32  ;;  %p1408_p0 = scmp.lt.s32.totalorder %s1993_s6, %s1406_s18 }
 0x248   : > { %p1403_p6 = pnand %p1402_p3, %p2071_p13  ;;  %p1409_p2 = scmp.lt.s32.totalorder %s1407_s13, %s1401_s21 }
 0x24a   : > { %p1404_p8 = pneg %p1403_p6  ;;  %p1410_p7 = por %p1409_p2, %p1408_p0 }
 0x24c   : > { %p1411_p12 = pnand %p1410_p7, %p1404_p8 }
 0x24e   : > { %1414 = shalt.err (!%p1411_p12)
}
 0x24f   : > { %s1415_s11 = scalar_lea.hbm %s1990_s28, 16  ;;  %s1419_s14 = scalar_lea.hbm %s2046_s4, 32 }
 0x250   : > { %p1416_p5 = scmp.ne.s32.totalorder %s1990_s28, %s1415_s11  ;;  %p1420_p11 = scmp.lt.u32.totalorder %s1990_s28, %s2046_s4 }
 0x251   : > { %p1421_p4 = scmp.lt.u32.totalorder %s1419_s14, %s1415_s11  ;;  %p1423_p3 = scmp.lt.u32.totalorder %s1415_s11, %s1990_s28 }
 0x252   : > { %p1417_p10 = pnand %p1416_p5, %p2071_p13 }
 0x253   : > { %p1422_p1 = por %p1421_p4, %p1420_p11 }
 0x254   : > { %p1418_p9 = pneg %p1417_p10 }
 0x255   : > { %p1424_p6 = por %p1423_p3, %p1422_p1 }
 0x257   : > { %p1425_p8 = pnand %p1424_p6, %p1418_p9 }
 0x259   : > { %1428 = shalt.err (!%p1425_p8)
}
 0x25a   : > { %1153 = dma.vmem_to_hbm [thread:$0]  (%p2071_p13), %s1993_s6, 16, %s1990_s28, %s802_s22  }
 0x25b PF: > { %s839_s24 = sand.u32 1, %s1471_s15   ;;  %p2072_p0 = scmp.ne.s32.totalorder %s2059_s27, 0 }
 0x25c   : > { %p2073_p2 = scmp.ge.s32.totalorder %s1491_s20, 2  ;;  %s840_s23 = scalar_lea.sflag [#allocation6], %s839_s24 }
 0x25e   : > { %p1165_p7 = pnand %p2073_p2, %p2072_p0 }
 0x260   : > { %1462 = dma.done.wait (!%p1165_p7), %s840_s23, 16  }
 0x261   : > { %1464 = vsyncadd (!%p1165_p7), %s840_s23, 4294967280  ;;  %s848_s9 = scalar_lea.sflag [#allocation11], %s839_s24 }
 0x262   : > { %1466 = dma.done.wait (!%p1165_p7), %s848_s9, 16  }
 0x263   : > { %1468 = vsyncadd (!%p1165_p7), %s848_s9, 4294967280  ;;  %s25_s20 = sadd.s32 1, %s1491_s20   ;;  %s2074_s15 = smov %s1475_s16 }
 0x264   : > { %p22_p12 = scmp.ge.s32.totalorder %s25_s20, 4   ;;  %s2075_s16 = smov %s1479_s17 }
 0x265   : > { %s2076_s17 = smov %s1648_s8  ;;  %s2077_s18 = smov %s1487_s19 }
 0x266   : > { %s2078_s19 = smov %s2080_s7  ;;  %24 = sbr.rel (!%p22_p12) target bundleno = 9 (0x9), region = 111 }
 0x26d   :  { %852 = vsyncpa [#allocation5], 1 }
 0x26e   :  { %854 = vsyncpa [#allocation5 + $0x1], 1 }
 0x26f   :  { %855 = vsyncpa [#allocation8], 1 }
 0x270   :  { %857 = vsyncpa [#allocation8 + $0x1], 1 }
 0x271   :  { %858 = vsyncpa [#allocation6], 1 }
 0x272   :  { %860 = vsyncpa [#allocation6 + $0x1], 1 }
 0x273   :  { %861 = vsyncpa [#allocation11], 1 }
 0x274   :  { %863 = vsyncpa [#allocation11 + $0x1], 1 }

</bundles_post_ra>
